<compile_context>
chip_gen: v7x
topology: tpu7x:2x2x1
jax: 0.10.0
libtpu: 0.0.40
codegen_flags: <defaults>
</compile_context>

<pallas_src>
import functools
import math

import jax
import jax.numpy as jnp
from jax.experimental import pallas as pl
from jax.experimental.pallas import tpu as pltpu

CLAMP = 2.0  # FrEIA AllInOneBlock default affine_clamping
_LANE = 128


def _round_up(x, m):
    return ((x + m - 1) // m) * m


# ---------------------------------------------------------------------------
# Kernel
# ---------------------------------------------------------------------------
def _affine_flow_kernel(zT_ref, w0_ref, b0_ref, wh_ref, bh_ref,
                        wst_ref, bst_ref, wp_ref, pb_ref, plj_ref,
                        zkT_ref, ldjT_ref, *, num_flows, n_hidden, class_dim):
    D = class_dim
    x = zT_ref[...].astype(jnp.float32)                 # (D, TB)
    ldj = jnp.zeros(ldjT_ref.shape, jnp.float32)        # (1, TB)

    # All flows in one grid step (static loop over a small, known trip count);
    # per-flow params are VMEM-resident and statically indexed.
    for f in range(num_flows):
        # ---- coupling subnet (first layer zero-padded over the active half,
        # so no lane slicing of x is needed: h = relu(W0p^T @ x + b0))
        h = jnp.dot(w0_ref[f], x, preferred_element_type=jnp.float32) + b0_ref[f]
        h = jnp.maximum(h, 0.0)
        for l in range(n_hidden):                        # tiny static trip count
            h = jnp.dot(wh_ref[f, l], h, preferred_element_type=jnp.float32) + bh_ref[f, l]
            h = jnp.maximum(h, 0.0)

        # ---- fused full-width s/t heads: one (2D, cd) matmul, split on the
        # sublane axis at D (0.1 scaling folded into the weights; passive rows
        # have zero weight+bias => multiplier exp(2*tanh(0)) = 1, shift 0)
        st = jnp.dot(wst_ref[f], h, preferred_element_type=jnp.float32) + bst_ref[f]
        sj = CLAMP * jnp.tanh(st[:D, :])                 # (D, TB)
        t = st[D:, :]                                    # (D, TB)

        x = x * jnp.exp(sj) + t                          # no concatenate needed

        # log-det: coupling jacobian + precomputed sum(log(global scale))
        ldj = ldj + jnp.sum(sj, axis=0, keepdims=True) + plj_ref[f]

        # ---- soft permutation with the global affine folded in (row-scaled
        # W.T, folded bias): x_new^T = Wsc^T @ x_mid^T + (go @ W.T)^T
        x = jnp.dot(wp_ref[f], x, preferred_element_type=jnp.float32) + pb_ref[f]

    zkT_ref[...] = x.astype(zkT_ref.dtype)
    ldjT_ref[...] = ldj.astype(ldjT_ref.dtype)


# ---------------------------------------------------------------------------
# Wrapper
# ---------------------------------------------------------------------------
def _pick_batch_tile(B):
    """Lane-dense batch tile: ~2048 target, padding-minimizing, and >= 2 tiles
    when the batch allows it (so both v7x TensorCores get work)."""
    target = 2048
    n_tiles = max(1, -(-B // target))
    TB = _round_up(-(-B // n_tiles), _LANE)
    if B > _LANE and _round_up(B, TB) // TB < 2:
        TB = max(_LANE, _round_up(-(-B // 2), _LANE))
    return TB


def affine_flow_forward(z0, kernel_params, *, num_flows, nbr_coupling_block_layers,
                        batch_tile=None):
    """Pallas implementation of AffineFlow.forward."""
    if num_flows == 0:
        # Mirrors the PyTorch module exactly: `return (z0, torch.zeros_like(z0))`
        # (the module's own quirk: this branch's "logdet" has shape (B, D)).
        return z0, jnp.zeros_like(z0)

    B, D = z0.shape
    if batch_tile is None:
        TB = _pick_batch_tile(B)
    else:
        TB = _round_up(batch_tile, _LANE)   # enforce lane-dense (128-multiple) tiles
    Bp = _round_up(B, TB)

    # Feature-major layout: class_dim on sublanes, batch on lanes (lane-dense).
    zT = jnp.zeros((D, Bp), z0.dtype).at[:, :B].set(z0.T)

    kernel = functools.partial(
        _affine_flow_kernel,
        num_flows=num_flows,
        n_hidden=nbr_coupling_block_layers,
        class_dim=D,
    )

    def resident_spec(p):
        # full-array block, constant index -> fetched once, VMEM-resident
        nd = p.ndim
        return pl.BlockSpec(p.shape, lambda b, _nd=nd: (0,) * _nd)

    grid_spec = pltpu.PrefetchScalarGridSpec(
        num_scalar_prefetch=0,
        grid=(Bp // TB,),                                 # batch tiles only
        in_specs=[pl.BlockSpec((D, TB), lambda b: (0, b))]
                 + [resident_spec(p) for p in kernel_params],
        out_specs=[pl.BlockSpec((D, TB), lambda b: (0, b)),
                   pl.BlockSpec((1, TB), lambda b: (0, b))],
    )

    zkT, ldjT = pl.pallas_call(
        kernel,
        grid_spec=grid_spec,
        out_shape=[jax.ShapeDtypeStruct((D, Bp), z0.dtype),
                   jax.ShapeDtypeStruct((1, Bp), jnp.float32)],
        input_output_aliases={0: 0},                      # reuse z buffer for zk
        compiler_params=pltpu.CompilerParams(
            dimension_semantics=("parallel",)),
    )(zT, *kernel_params)

    return zkT[:, :B].T, ldjT[0, :B]


# ---------------------------------------------------------------------------
# Parameter construction (module-faithful raw params + host-side folding)
# ---------------------------------------------------------------------------
def init_raw_params(key, class_dim, coupling_dim, num_flows, n_hidden):
    """Synthetic init matching the module's parameter shapes (Linear weights
    stored as (fan_in, fan_out))."""
    split1 = class_dim - class_dim // 2
    split2 = class_dim // 2
    L = max(n_hidden, 1)  # keep non-empty arrays; unused in kernel if n_hidden == 0
    ks = jax.random.split(key, 4)

    def linear(k, prefix, fan_in, fan_out):
        bound = 1.0 / math.sqrt(fan_in)          # torch.nn.Linear default init
        kw, kb = jax.random.split(k)
        w = jax.random.uniform(kw, prefix + (fan_in, fan_out), jnp.float32, -bound, bound)
        b = jax.random.uniform(kb, prefix + (fan_out,), jnp.float32, -bound, bound)
        return w, b

    w0, b0 = linear(ks[0], (num_flows,), split1, coupling_dim)
    wh, bh = linear(ks[1], (num_flows, L), coupling_dim, coupling_dim)
    wo, bo = linear(ks[2], (num_flows,), coupling_dim, 2 * split2)

    # FrEIA SOFTPLUS global affine with global_affine_init=1.0 -> scale == 1.0
    gs_const = 2.0 * math.log(math.expm1(0.5 * 10.0 * 1.0))
    gs = jnp.full((num_flows, class_dim), gs_const, jnp.float32)
    go = jnp.zeros((num_flows, class_dim), jnp.float32)

    # permute_soft=True: random special-orthogonal matrix per flow
    mats = []
    for kk in jax.random.split(ks[3], num_flows):
        A = jax.random.normal(kk, (class_dim, class_dim), jnp.float32)
        Q, R = jnp.linalg.qr(A)
        Q = Q * jnp.sign(jnp.diagonal(R))[None, :]
        Q = Q.at[:, 0].multiply(jnp.sign(jnp.linalg.det(Q)))  # det = +1
        mats.append(Q)
    wperm = jnp.stack(mats, axis=0)

    return (w0, b0, wh, bh, wo, bo, gs, go, wperm)


def prepare_kernel_params(raw, class_dim, coupling_dim):
    """Host-side folding: global affine folded into the permutation, subnet
    heads made full-width, fused (s|t), and transposed for the feature-major
    kernel layout."""
    w0, b0, wh, bh, wo, bo, gs, go, wperm = raw
    nf = w0.shape[0]
    D, cd = class_dim, coupling_dim
    split1 = D - D // 2
    split2 = D // 2

    # first subnet layer, zero-padded over the active half (no lane slicing in-kernel)
    kW0 = jnp.zeros((nf, cd, D), jnp.float32).at[:, :, :split1].set(
        jnp.transpose(w0, (0, 2, 1)))
    kB0 = b0[:, :, None]                                         # (nf, cd, 1)

    kWh = jnp.transpose(wh, (0, 1, 3, 2))                        # (nf, L, cd, cd)
    kBh = bh[:, :, :, None]                                      # (nf, L, cd, 1)

    # split final layer into full-width s / t heads, fold the 0.1 FrEIA scaling,
    # place active half at lanes [split1, D) (passive lanes: zero weight+bias),
    # then fuse into one (2D, cd) head: rows [0, D) = s, rows [D, 2D) = t.
    ws_full = jnp.zeros((nf, cd, D), jnp.float32).at[:, :, split1:].set(0.1 * wo[:, :, :split2])
    bs_full = jnp.zeros((nf, D), jnp.float32).at[:, split1:].set(0.1 * bo[:, :split2])
    wt_full = jnp.zeros((nf, cd, D), jnp.float32).at[:, :, split1:].set(0.1 * wo[:, :, split2:])
    bt_full = jnp.zeros((nf, D), jnp.float32).at[:, split1:].set(0.1 * bo[:, split2:])
    kWst = jnp.concatenate([jnp.transpose(ws_full, (0, 2, 1)),
                            jnp.transpose(wt_full, (0, 2, 1))], axis=1)   # (nf, 2D, cd)
    kBst = jnp.concatenate([bs_full, bt_full], axis=1)[:, :, None]        # (nf, 2D, 1)

    # fold global affine (stable softplus) into the soft permutation
    scale = 0.1 * 2.0 * jax.nn.softplus(0.5 * gs)                # (nf, D)
    wpt = jnp.transpose(wperm, (0, 2, 1))                        # W_perm.T
    wsc = scale[:, :, None] * wpt                                # diag(scale) @ W.T
    kWp = jnp.transpose(wsc, (0, 2, 1))                          # (nf, D, D)
    kPb = jnp.einsum('fd,fde->fe', go, wpt)[:, :, None]          # (nf, D, 1)
    kPlj = jnp.sum(jnp.log(scale), axis=1)[:, None, None]        # (nf, 1, 1)

    return (kW0, kB0, kWh, kBh, kWst, kBst, kWp, kPb, kPlj)


# ---------------------------------------------------------------------------
# Pure-JAX reference (uses the raw, unfolded parameters)
# ---------------------------------------------------------------------------
def reference_forward(z0, raw, num_flows, n_hidden, class_dim):
    split1 = class_dim - class_dim // 2
    split2 = class_dim // 2
    w0, b0, wh, bh, wo, bo, gs, go, wperm = raw
    x = z0.astype(jnp.float32)
    ldj = jnp.zeros((z0.shape[0],), jnp.float32)
    for f in range(num_flows):
        x1, x2 = x[:, :split1], x[:, split1:]
        h = jax.nn.relu(x1 @ w0[f] + b0[f])
        for l in range(n_hidden):
            h = jax.nn.relu(h @ wh[f, l] + bh[f, l])
        a = 0.1 * (h @ wo[f] + bo[f])
        sj = CLAMP * jnp.tanh(a[:, :split2])
        x2 = x2 * jnp.exp(sj) + a[:, split2:]
        x_out = jnp.concatenate([x1, x2], axis=1)
        scale = 0.1 * 2.0 * jax.nn.softplus(0.5 * gs[f])
        ldj = ldj + jnp.sum(sj, axis=1) + jnp.sum(jnp.log(scale))
        x = (x_out * scale + go[f]) @ wperm[f].T
    return x, ldj


if __name__ == "__main__":
    class_dim = 16
    coupling_dim = 32
    num_flows = 3
    nbr_coupling_block_layers = 1
    batch = 32

    key = jax.random.PRNGKey(0)
    kz, kp = jax.random.split(key)
    z0 = jax.random.normal(kz, (batch, class_dim), jnp.float32)

    raw = init_raw_params(kp, class_dim, coupling_dim, num_flows, nbr_coupling_block_layers)
    kparams = prepare_kernel_params(raw, class_dim, coupling_dim)

    zk, ldj = affine_flow_forward(
        z0, kparams, num_flows=num_flows,
        nbr_coupling_block_layers=nbr_coupling_block_layers)
    jax.block_until_ready((zk, ldj))

    zk_ref, ldj_ref = reference_forward(z0, raw, num_flows,
                                        nbr_coupling_block_layers, class_dim)
    assert zk.shape == (batch, class_dim)
    assert ldj.shape == (batch,)
    assert jnp.allclose(zk, zk_ref, atol=2e-4, rtol=2e-4), \
        float(jnp.max(jnp.abs(zk - zk_ref)))
    assert jnp.allclose(ldj, ldj_ref, atol=2e-4, rtol=2e-4), \
        float(jnp.max(jnp.abs(ldj - ldj_ref)))

    print("KERNEL_OK")
</pallas_src>

<mosaic_0001>
module attributes {stable_mosaic.version = 11 : i64} {
  func.func @_affine_flow_kernel(%arg0: i32, %arg1: memref<16x128xf32, #tpu.memory_space<vmem>>, %arg2: memref<3x32x16xf32, #tpu.memory_space<vmem>>, %arg3: memref<3x32x1xf32, #tpu.memory_space<vmem>>, %arg4: memref<3x1x32x32xf32, #tpu.memory_space<vmem>>, %arg5: memref<3x1x32x1xf32, #tpu.memory_space<vmem>>, %arg6: memref<3x32x32xf32, #tpu.memory_space<vmem>>, %arg7: memref<3x32x1xf32, #tpu.memory_space<vmem>>, %arg8: memref<3x16x16xf32, #tpu.memory_space<vmem>>, %arg9: memref<3x16x1xf32, #tpu.memory_space<vmem>>, %arg10: memref<3x1x1xf32, #tpu.memory_space<vmem>>, %arg11: memref<16x128xf32, #tpu.memory_space<vmem>>, %arg12: memref<1x128xf32, #tpu.memory_space<vmem>>) attributes {dimension_semantics = [#tpu.dimension_semantics<parallel>], iteration_bounds = array<i64: 1>, scalar_prefetch = 0 : i64, scratch_operands = 0 : i64, tpu.core_type = #tpu.core_type<tc>, window_params = [{transform_indices = @transform_0, window_bounds = array<i64: 16, 128>}, {pipeline_mode = #tpu.pipeline_mode<synchronous>, transform_indices = @transform_1, window_bounds = array<i64: 3, 32, 16>}, {pipeline_mode = #tpu.pipeline_mode<synchronous>, transform_indices = @transform_2, window_bounds = array<i64: 3, 32, 1>}, {pipeline_mode = #tpu.pipeline_mode<synchronous>, transform_indices = @transform_3, window_bounds = array<i64: 3, 1, 32, 32>}, {pipeline_mode = #tpu.pipeline_mode<synchronous>, transform_indices = @transform_4, window_bounds = array<i64: 3, 1, 32, 1>}, {pipeline_mode = #tpu.pipeline_mode<synchronous>, transform_indices = @transform_5, window_bounds = array<i64: 3, 32, 32>}, {pipeline_mode = #tpu.pipeline_mode<synchronous>, transform_indices = @transform_6, window_bounds = array<i64: 3, 32, 1>}, {pipeline_mode = #tpu.pipeline_mode<synchronous>, transform_indices = @transform_7, window_bounds = array<i64: 3, 16, 16>}, {pipeline_mode = #tpu.pipeline_mode<synchronous>, transform_indices = @transform_8, window_bounds = array<i64: 3, 16, 1>}, {pipeline_mode = #tpu.pipeline_mode<synchronous>, transform_indices = @transform_9, window_bounds = array<i64: 3, 1, 1>}, {transform_indices = @transform_10, window_bounds = array<i64: 16, 128>}, {transform_indices = @transform_11, window_bounds = array<i64: 1, 128>}]} {
    %c0 = arith.constant 0 : index
    %c0_0 = arith.constant 0 : index
    %0 = vector.load %arg1[%c0, %c0_0] : memref<16x128xf32, #tpu.memory_space<vmem>>, vector<16x128xf32>
    %cst = arith.constant 0.000000e+00 : f32
    %1 = vector.broadcast %cst : f32 to vector<1x128xf32>
    %c0_1 = arith.constant 0 : index
    %c0_2 = arith.constant 0 : index
    %c0_3 = arith.constant 0 : index
    %2 = vector.load %arg2[%c0_1, %c0_2, %c0_3] : memref<3x32x16xf32, #tpu.memory_space<vmem>>, vector<1x32x16xf32>
    %3 = vector.shape_cast %2 : vector<1x32x16xf32> to vector<32x16xf32>
    %cst_4 = arith.constant dense<0.000000e+00> : vector<32x128xf32>
    %4 = tpu.matmul %3, %0, %cst_4 {dimension_numbers = #tpu.dot_dimension_numbers<[1], [0], [0], [1], [0, 0, 1, 1], [], []>} : vector<32x16xf32>, vector<16x128xf32>, vector<32x128xf32> -> vector<32x128xf32>
    %c0_5 = arith.constant 0 : index
    %c0_6 = arith.constant 0 : index
    %c0_7 = arith.constant 0 : index
    %5 = vector.load %arg3[%c0_5, %c0_6, %c0_7] : memref<3x32x1xf32, #tpu.memory_space<vmem>>, vector<1x32x1xf32>
    %6 = vector.shape_cast %5 : vector<1x32x1xf32> to vector<32x1xf32>
    %7 = vector.broadcast %6 : vector<32x1xf32> to vector<32x128xf32>
    %8 = arith.addf %4, %7 : vector<32x128xf32>
    %cst_8 = arith.constant 0.000000e+00 : f32
    %9 = vector.broadcast %cst_8 : f32 to vector<32x128xf32>
    %10 = arith.maximumf %8, %9 : vector<32x128xf32>
    %c0_9 = arith.constant 0 : index
    %c0_10 = arith.constant 0 : index
    %c0_11 = arith.constant 0 : index
    %c0_12 = arith.constant 0 : index
    %11 = vector.load %arg4[%c0_9, %c0_10, %c0_11, %c0_12] : memref<3x1x32x32xf32, #tpu.memory_space<vmem>>, vector<1x1x32x32xf32>
    %12 = vector.shape_cast %11 : vector<1x1x32x32xf32> to vector<32x32xf32>
    %cst_13 = arith.constant dense<0.000000e+00> : vector<32x128xf32>
    %13 = tpu.matmul %12, %10, %cst_13 {dimension_numbers = #tpu.dot_dimension_numbers<[1], [0], [0], [1], [0, 0, 1, 1], [], []>} : vector<32x32xf32>, vector<32x128xf32>, vector<32x128xf32> -> vector<32x128xf32>
    %c0_14 = arith.constant 0 : index
    %c0_15 = arith.constant 0 : index
    %c0_16 = arith.constant 0 : index
    %c0_17 = arith.constant 0 : index
    %14 = vector.load %arg5[%c0_14, %c0_15, %c0_16, %c0_17] : memref<3x1x32x1xf32, #tpu.memory_space<vmem>>, vector<1x1x32x1xf32>
    %15 = vector.shape_cast %14 : vector<1x1x32x1xf32> to vector<32x1xf32>
    %16 = vector.broadcast %15 : vector<32x1xf32> to vector<32x128xf32>
    %17 = arith.addf %13, %16 : vector<32x128xf32>
    %cst_18 = arith.constant 0.000000e+00 : f32
    %18 = vector.broadcast %cst_18 : f32 to vector<32x128xf32>
    %19 = arith.maximumf %17, %18 : vector<32x128xf32>
    %c0_19 = arith.constant 0 : index
    %c0_20 = arith.constant 0 : index
    %c0_21 = arith.constant 0 : index
    %20 = vector.load %arg6[%c0_19, %c0_20, %c0_21] : memref<3x32x32xf32, #tpu.memory_space<vmem>>, vector<1x32x32xf32>
    %21 = vector.shape_cast %20 : vector<1x32x32xf32> to vector<32x32xf32>
    %cst_22 = arith.constant dense<0.000000e+00> : vector<32x128xf32>
    %22 = tpu.matmul %21, %19, %cst_22 {dimension_numbers = #tpu.dot_dimension_numbers<[1], [0], [0], [1], [0, 0, 1, 1], [], []>} : vector<32x32xf32>, vector<32x128xf32>, vector<32x128xf32> -> vector<32x128xf32>
    %c0_23 = arith.constant 0 : index
    %c0_24 = arith.constant 0 : index
    %c0_25 = arith.constant 0 : index
    %23 = vector.load %arg7[%c0_23, %c0_24, %c0_25] : memref<3x32x1xf32, #tpu.memory_space<vmem>>, vector<1x32x1xf32>
    %24 = vector.shape_cast %23 : vector<1x32x1xf32> to vector<32x1xf32>
    %25 = vector.broadcast %24 : vector<32x1xf32> to vector<32x128xf32>
    %26 = arith.addf %22, %25 : vector<32x128xf32>
    %27 = vector.extract_strided_slice %26 {offsets = [0, 0], sizes = [16, 128], strides = [1, 1]} : vector<32x128xf32> to vector<16x128xf32>
    %28 = math.tanh %27 : vector<16x128xf32>
    %cst_26 = arith.constant 2.000000e+00 : f32
    %29 = vector.broadcast %cst_26 : f32 to vector<16x128xf32>
    %30 = arith.mulf %29, %28 : vector<16x128xf32>
    %31 = vector.extract_strided_slice %26 {offsets = [16, 0], sizes = [16, 128], strides = [1, 1]} : vector<32x128xf32> to vector<16x128xf32>
    %32 = math.exp %30 : vector<16x128xf32>
    %33 = arith.mulf %0, %32 : vector<16x128xf32>
    %34 = arith.addf %33, %31 : vector<16x128xf32>
    %cst_27 = arith.constant dense<0.000000e+00> : vector<128xf32>
    %35 = vector.multi_reduction <add>, %30, %cst_27 [0] : vector<16x128xf32> to vector<128xf32>
    %36 = vector.shape_cast %35 : vector<128xf32> to vector<1x128xf32>
    %37 = arith.addf %1, %36 : vector<1x128xf32>
    %c0_28 = arith.constant 0 : index
    %c0_29 = arith.constant 0 : index
    %c0_30 = arith.constant 0 : index
    %38 = vector.load %arg10[%c0_28, %c0_29, %c0_30] : memref<3x1x1xf32, #tpu.memory_space<vmem>>, vector<1x1x1xf32>
    %39 = vector.shape_cast %38 : vector<1x1x1xf32> to vector<1x1xf32>
    %40 = vector.broadcast %39 : vector<1x1xf32> to vector<1x128xf32>
    %41 = arith.addf %37, %40 : vector<1x128xf32>
    %c0_31 = arith.constant 0 : index
    %c0_32 = arith.constant 0 : index
    %c0_33 = arith.constant 0 : index
    %42 = vector.load %arg8[%c0_31, %c0_32, %c0_33] : memref<3x16x16xf32, #tpu.memory_space<vmem>>, vector<1x16x16xf32>
    %43 = vector.shape_cast %42 : vector<1x16x16xf32> to vector<16x16xf32>
    %cst_34 = arith.constant dense<0.000000e+00> : vector<16x128xf32>
    %44 = tpu.matmul %43, %34, %cst_34 {dimension_numbers = #tpu.dot_dimension_numbers<[1], [0], [0], [1], [0, 0, 1, 1], [], []>} : vector<16x16xf32>, vector<16x128xf32>, vector<16x128xf32> -> vector<16x128xf32>
    %c0_35 = arith.constant 0 : index
    %c0_36 = arith.constant 0 : index
    %c0_37 = arith.constant 0 : index
    %45 = vector.load %arg9[%c0_35, %c0_36, %c0_37] : memref<3x16x1xf32, #tpu.memory_space<vmem>>, vector<1x16x1xf32>
    %46 = vector.shape_cast %45 : vector<1x16x1xf32> to vector<16x1xf32>
    %47 = vector.broadcast %46 : vector<16x1xf32> to vector<16x128xf32>
    %48 = arith.addf %44, %47 : vector<16x128xf32>
    %c1 = arith.constant 1 : index
    %c0_38 = arith.constant 0 : index
    %c0_39 = arith.constant 0 : index
    %49 = vector.load %arg2[%c1, %c0_38, %c0_39] : memref<3x32x16xf32, #tpu.memory_space<vmem>>, vector<1x32x16xf32>
    %50 = vector.shape_cast %49 : vector<1x32x16xf32> to vector<32x16xf32>
    %cst_40 = arith.constant dense<0.000000e+00> : vector<32x128xf32>
    %51 = tpu.matmul %50, %48, %cst_40 {dimension_numbers = #tpu.dot_dimension_numbers<[1], [0], [0], [1], [0, 0, 1, 1], [], []>} : vector<32x16xf32>, vector<16x128xf32>, vector<32x128xf32> -> vector<32x128xf32>
    %c1_41 = arith.constant 1 : index
    %c0_42 = arith.constant 0 : index
    %c0_43 = arith.constant 0 : index
    %52 = vector.load %arg3[%c1_41, %c0_42, %c0_43] : memref<3x32x1xf32, #tpu.memory_space<vmem>>, vector<1x32x1xf32>
    %53 = vector.shape_cast %52 : vector<1x32x1xf32> to vector<32x1xf32>
    %54 = vector.broadcast %53 : vector<32x1xf32> to vector<32x128xf32>
    %55 = arith.addf %51, %54 : vector<32x128xf32>
    %cst_44 = arith.constant 0.000000e+00 : f32
    %56 = vector.broadcast %cst_44 : f32 to vector<32x128xf32>
    %57 = arith.maximumf %55, %56 : vector<32x128xf32>
    %c1_45 = arith.constant 1 : index
    %c0_46 = arith.constant 0 : index
    %c0_47 = arith.constant 0 : index
    %c0_48 = arith.constant 0 : index
    %58 = vector.load %arg4[%c1_45, %c0_46, %c0_47, %c0_48] : memref<3x1x32x32xf32, #tpu.memory_space<vmem>>, vector<1x1x32x32xf32>
    %59 = vector.shape_cast %58 : vector<1x1x32x32xf32> to vector<32x32xf32>
    %cst_49 = arith.constant dense<0.000000e+00> : vector<32x128xf32>
    %60 = tpu.matmul %59, %57, %cst_49 {dimension_numbers = #tpu.dot_dimension_numbers<[1], [0], [0], [1], [0, 0, 1, 1], [], []>} : vector<32x32xf32>, vector<32x128xf32>, vector<32x128xf32> -> vector<32x128xf32>
    %c1_50 = arith.constant 1 : index
    %c0_51 = arith.constant 0 : index
    %c0_52 = arith.constant 0 : index
    %c0_53 = arith.constant 0 : index
    %61 = vector.load %arg5[%c1_50, %c0_51, %c0_52, %c0_53] : memref<3x1x32x1xf32, #tpu.memory_space<vmem>>, vector<1x1x32x1xf32>
    %62 = vector.shape_cast %61 : vector<1x1x32x1xf32> to vector<32x1xf32>
    %63 = vector.broadcast %62 : vector<32x1xf32> to vector<32x128xf32>
    %64 = arith.addf %60, %63 : vector<32x128xf32>
    %cst_54 = arith.constant 0.000000e+00 : f32
    %65 = vector.broadcast %cst_54 : f32 to vector<32x128xf32>
    %66 = arith.maximumf %64, %65 : vector<32x128xf32>
    %c1_55 = arith.constant 1 : index
    %c0_56 = arith.constant 0 : index
    %c0_57 = arith.constant 0 : index
    %67 = vector.load %arg6[%c1_55, %c0_56, %c0_57] : memref<3x32x32xf32, #tpu.memory_space<vmem>>, vector<1x32x32xf32>
    %68 = vector.shape_cast %67 : vector<1x32x32xf32> to vector<32x32xf32>
    %cst_58 = arith.constant dense<0.000000e+00> : vector<32x128xf32>
    %69 = tpu.matmul %68, %66, %cst_58 {dimension_numbers = #tpu.dot_dimension_numbers<[1], [0], [0], [1], [0, 0, 1, 1], [], []>} : vector<32x32xf32>, vector<32x128xf32>, vector<32x128xf32> -> vector<32x128xf32>
    %c1_59 = arith.constant 1 : index
    %c0_60 = arith.constant 0 : index
    %c0_61 = arith.constant 0 : index
    %70 = vector.load %arg7[%c1_59, %c0_60, %c0_61] : memref<3x32x1xf32, #tpu.memory_space<vmem>>, vector<1x32x1xf32>
    %71 = vector.shape_cast %70 : vector<1x32x1xf32> to vector<32x1xf32>
    %72 = vector.broadcast %71 : vector<32x1xf32> to vector<32x128xf32>
    %73 = arith.addf %69, %72 : vector<32x128xf32>
    %74 = vector.extract_strided_slice %73 {offsets = [0, 0], sizes = [16, 128], strides = [1, 1]} : vector<32x128xf32> to vector<16x128xf32>
    %75 = math.tanh %74 : vector<16x128xf32>
    %cst_62 = arith.constant 2.000000e+00 : f32
    %76 = vector.broadcast %cst_62 : f32 to vector<16x128xf32>
    %77 = arith.mulf %76, %75 : vector<16x128xf32>
    %78 = vector.extract_strided_slice %73 {offsets = [16, 0], sizes = [16, 128], strides = [1, 1]} : vector<32x128xf32> to vector<16x128xf32>
    %79 = math.exp %77 : vector<16x128xf32>
    %80 = arith.mulf %48, %79 : vector<16x128xf32>
    %81 = arith.addf %80, %78 : vector<16x128xf32>
    %cst_63 = arith.constant dense<0.000000e+00> : vector<128xf32>
    %82 = vector.multi_reduction <add>, %77, %cst_63 [0] : vector<16x128xf32> to vector<128xf32>
    %83 = vector.shape_cast %82 : vector<128xf32> to vector<1x128xf32>
    %84 = arith.addf %41, %83 : vector<1x128xf32>
    %c1_64 = arith.constant 1 : index
    %c0_65 = arith.constant 0 : index
    %c0_66 = arith.constant 0 : index
    %85 = vector.load %arg10[%c1_64, %c0_65, %c0_66] : memref<3x1x1xf32, #tpu.memory_space<vmem>>, vector<1x1x1xf32>
    %86 = vector.shape_cast %85 : vector<1x1x1xf32> to vector<1x1xf32>
    %87 = vector.broadcast %86 : vector<1x1xf32> to vector<1x128xf32>
    %88 = arith.addf %84, %87 : vector<1x128xf32>
    %c1_67 = arith.constant 1 : index
    %c0_68 = arith.constant 0 : index
    %c0_69 = arith.constant 0 : index
    %89 = vector.load %arg8[%c1_67, %c0_68, %c0_69] : memref<3x16x16xf32, #tpu.memory_space<vmem>>, vector<1x16x16xf32>
    %90 = vector.shape_cast %89 : vector<1x16x16xf32> to vector<16x16xf32>
    %cst_70 = arith.constant dense<0.000000e+00> : vector<16x128xf32>
    %91 = tpu.matmul %90, %81, %cst_70 {dimension_numbers = #tpu.dot_dimension_numbers<[1], [0], [0], [1], [0, 0, 1, 1], [], []>} : vector<16x16xf32>, vector<16x128xf32>, vector<16x128xf32> -> vector<16x128xf32>
    %c1_71 = arith.constant 1 : index
    %c0_72 = arith.constant 0 : index
    %c0_73 = arith.constant 0 : index
    %92 = vector.load %arg9[%c1_71, %c0_72, %c0_73] : memref<3x16x1xf32, #tpu.memory_space<vmem>>, vector<1x16x1xf32>
    %93 = vector.shape_cast %92 : vector<1x16x1xf32> to vector<16x1xf32>
    %94 = vector.broadcast %93 : vector<16x1xf32> to vector<16x128xf32>
    %95 = arith.addf %91, %94 : vector<16x128xf32>
    %c2 = arith.constant 2 : index
    %c0_74 = arith.constant 0 : index
    %c0_75 = arith.constant 0 : index
    %96 = vector.load %arg2[%c2, %c0_74, %c0_75] : memref<3x32x16xf32, #tpu.memory_space<vmem>>, vector<1x32x16xf32>
    %97 = vector.shape_cast %96 : vector<1x32x16xf32> to vector<32x16xf32>
    %cst_76 = arith.constant dense<0.000000e+00> : vector<32x128xf32>
    %98 = tpu.matmul %97, %95, %cst_76 {dimension_numbers = #tpu.dot_dimension_numbers<[1], [0], [0], [1], [0, 0, 1, 1], [], []>} : vector<32x16xf32>, vector<16x128xf32>, vector<32x128xf32> -> vector<32x128xf32>
    %c2_77 = arith.constant 2 : index
    %c0_78 = arith.constant 0 : index
    %c0_79 = arith.constant 0 : index
    %99 = vector.load %arg3[%c2_77, %c0_78, %c0_79] : memref<3x32x1xf32, #tpu.memory_space<vmem>>, vector<1x32x1xf32>
    %100 = vector.shape_cast %99 : vector<1x32x1xf32> to vector<32x1xf32>
    %101 = vector.broadcast %100 : vector<32x1xf32> to vector<32x128xf32>
    %102 = arith.addf %98, %101 : vector<32x128xf32>
    %cst_80 = arith.constant 0.000000e+00 : f32
    %103 = vector.broadcast %cst_80 : f32 to vector<32x128xf32>
    %104 = arith.maximumf %102, %103 : vector<32x128xf32>
    %c2_81 = arith.constant 2 : index
    %c0_82 = arith.constant 0 : index
    %c0_83 = arith.constant 0 : index
    %c0_84 = arith.constant 0 : index
    %105 = vector.load %arg4[%c2_81, %c0_82, %c0_83, %c0_84] : memref<3x1x32x32xf32, #tpu.memory_space<vmem>>, vector<1x1x32x32xf32>
    %106 = vector.shape_cast %105 : vector<1x1x32x32xf32> to vector<32x32xf32>
    %cst_85 = arith.constant dense<0.000000e+00> : vector<32x128xf32>
    %107 = tpu.matmul %106, %104, %cst_85 {dimension_numbers = #tpu.dot_dimension_numbers<[1], [0], [0], [1], [0, 0, 1, 1], [], []>} : vector<32x32xf32>, vector<32x128xf32>, vector<32x128xf32> -> vector<32x128xf32>
    %c2_86 = arith.constant 2 : index
    %c0_87 = arith.constant 0 : index
    %c0_88 = arith.constant 0 : index
    %c0_89 = arith.constant 0 : index
    %108 = vector.load %arg5[%c2_86, %c0_87, %c0_88, %c0_89] : memref<3x1x32x1xf32, #tpu.memory_space<vmem>>, vector<1x1x32x1xf32>
    %109 = vector.shape_cast %108 : vector<1x1x32x1xf32> to vector<32x1xf32>
    %110 = vector.broadcast %109 : vector<32x1xf32> to vector<32x128xf32>
    %111 = arith.addf %107, %110 : vector<32x128xf32>
    %cst_90 = arith.constant 0.000000e+00 : f32
    %112 = vector.broadcast %cst_90 : f32 to vector<32x128xf32>
    %113 = arith.maximumf %111, %112 : vector<32x128xf32>
    %c2_91 = arith.constant 2 : index
    %c0_92 = arith.constant 0 : index
    %c0_93 = arith.constant 0 : index
    %114 = vector.load %arg6[%c2_91, %c0_92, %c0_93] : memref<3x32x32xf32, #tpu.memory_space<vmem>>, vector<1x32x32xf32>
    %115 = vector.shape_cast %114 : vector<1x32x32xf32> to vector<32x32xf32>
    %cst_94 = arith.constant dense<0.000000e+00> : vector<32x128xf32>
    %116 = tpu.matmul %115, %113, %cst_94 {dimension_numbers = #tpu.dot_dimension_numbers<[1], [0], [0], [1], [0, 0, 1, 1], [], []>} : vector<32x32xf32>, vector<32x128xf32>, vector<32x128xf32> -> vector<32x128xf32>
    %c2_95 = arith.constant 2 : index
    %c0_96 = arith.constant 0 : index
    %c0_97 = arith.constant 0 : index
    %117 = vector.load %arg7[%c2_95, %c0_96, %c0_97] : memref<3x32x1xf32, #tpu.memory_space<vmem>>, vector<1x32x1xf32>
    %118 = vector.shape_cast %117 : vector<1x32x1xf32> to vector<32x1xf32>
    %119 = vector.broadcast %118 : vector<32x1xf32> to vector<32x128xf32>
    %120 = arith.addf %116, %119 : vector<32x128xf32>
    %121 = vector.extract_strided_slice %120 {offsets = [0, 0], sizes = [16, 128], strides = [1, 1]} : vector<32x128xf32> to vector<16x128xf32>
    %122 = math.tanh %121 : vector<16x128xf32>
    %cst_98 = arith.constant 2.000000e+00 : f32
    %123 = vector.broadcast %cst_98 : f32 to vector<16x128xf32>
    %124 = arith.mulf %123, %122 : vector<16x128xf32>
    %125 = vector.extract_strided_slice %120 {offsets = [16, 0], sizes = [16, 128], strides = [1, 1]} : vector<32x128xf32> to vector<16x128xf32>
    %126 = math.exp %124 : vector<16x128xf32>
    %127 = arith.mulf %95, %126 : vector<16x128xf32>
    %128 = arith.addf %127, %125 : vector<16x128xf32>
    %cst_99 = arith.constant dense<0.000000e+00> : vector<128xf32>
    %129 = vector.multi_reduction <add>, %124, %cst_99 [0] : vector<16x128xf32> to vector<128xf32>
    %130 = vector.shape_cast %129 : vector<128xf32> to vector<1x128xf32>
    %131 = arith.addf %88, %130 : vector<1x128xf32>
    %c2_100 = arith.constant 2 : index
    %c0_101 = arith.constant 0 : index
    %c0_102 = arith.constant 0 : index
    %132 = vector.load %arg10[%c2_100, %c0_101, %c0_102] : memref<3x1x1xf32, #tpu.memory_space<vmem>>, vector<1x1x1xf32>
    %133 = vector.shape_cast %132 : vector<1x1x1xf32> to vector<1x1xf32>
    %134 = vector.broadcast %133 : vector<1x1xf32> to vector<1x128xf32>
    %135 = arith.addf %131, %134 : vector<1x128xf32>
    %c2_103 = arith.constant 2 : index
    %c0_104 = arith.constant 0 : index
    %c0_105 = arith.constant 0 : index
    %136 = vector.load %arg8[%c2_103, %c0_104, %c0_105] : memref<3x16x16xf32, #tpu.memory_space<vmem>>, vector<1x16x16xf32>
    %137 = vector.shape_cast %136 : vector<1x16x16xf32> to vector<16x16xf32>
    %cst_106 = arith.constant dense<0.000000e+00> : vector<16x128xf32>
    %138 = tpu.matmul %137, %128, %cst_106 {dimension_numbers = #tpu.dot_dimension_numbers<[1], [0], [0], [1], [0, 0, 1, 1], [], []>} : vector<16x16xf32>, vector<16x128xf32>, vector<16x128xf32> -> vector<16x128xf32>
    %c2_107 = arith.constant 2 : index
    %c0_108 = arith.constant 0 : index
    %c0_109 = arith.constant 0 : index
    %139 = vector.load %arg9[%c2_107, %c0_108, %c0_109] : memref<3x16x1xf32, #tpu.memory_space<vmem>>, vector<1x16x1xf32>
    %140 = vector.shape_cast %139 : vector<1x16x1xf32> to vector<16x1xf32>
    %141 = vector.broadcast %140 : vector<16x1xf32> to vector<16x128xf32>
    %142 = arith.addf %138, %141 : vector<16x128xf32>
    %c0_110 = arith.constant 0 : index
    %c0_111 = arith.constant 0 : index
    %143 = vector.load %arg11[%c0_110, %c0_111] : memref<16x128xf32, #tpu.memory_space<vmem>>, vector<16x128xf32>
    tpu.vector_store %arg11[%c0_110, %c0_111], %142 {strides = array<i32>} : memref<16x128xf32, #tpu.memory_space<vmem>>, vector<16x128xf32>,
    %c0_112 = arith.constant 0 : index
    %c0_113 = arith.constant 0 : index
    %144 = vector.load %arg12[%c0_112, %c0_113] : memref<1x128xf32, #tpu.memory_space<vmem>>, vector<1x128xf32>
    tpu.vector_store %arg12[%c0_112, %c0_113], %135 {strides = array<i32>} : memref<1x128xf32, #tpu.memory_space<vmem>>, vector<1x128xf32>,
    return
  }
  func.func @transform_0(%arg0: i32) -> (i32, i32) {
    %c0_i32 = arith.constant 0 : i32
    %c0_i32_0 = arith.constant 0 : i32
    return %c0_i32, %arg0 : i32, i32
  }
  func.func @transform_1(%arg0: i32) -> (i32, i32, i32) {
    %c0_i32 = arith.constant 0 : i32
    %c0_i32_0 = arith.constant 0 : i32
    %c0_i32_1 = arith.constant 0 : i32
    %c0_i32_2 = arith.constant 0 : i32
    return %c0_i32, %c0_i32_0, %c0_i32_1 : i32, i32, i32
  }
  func.func @transform_2(%arg0: i32) -> (i32, i32, i32) {
    %c0_i32 = arith.constant 0 : i32
    %c0_i32_0 = arith.constant 0 : i32
    %c0_i32_1 = arith.constant 0 : i32
    %c0_i32_2 = arith.constant 0 : i32
    return %c0_i32, %c0_i32_0, %c0_i32_1 : i32, i32, i32
  }
  func.func @transform_3(%arg0: i32) -> (i32, i32, i32, i32) {
    %c0_i32 = arith.constant 0 : i32
    %c0_i32_0 = arith.constant 0 : i32
    %c0_i32_1 = arith.constant 0 : i32
    %c0_i32_2 = arith.constant 0 : i32
    %c0_i32_3 = arith.constant 0 : i32
    return %c0_i32, %c0_i32_0, %c0_i32_1, %c0_i32_2 : i32, i32, i32, i32
  }
  func.func @transform_4(%arg0: i32) -> (i32, i32, i32, i32) {
    %c0_i32 = arith.constant 0 : i32
    %c0_i32_0 = arith.constant 0 : i32
    %c0_i32_1 = arith.constant 0 : i32
    %c0_i32_2 = arith.constant 0 : i32
    %c0_i32_3 = arith.constant 0 : i32
    return %c0_i32, %c0_i32_0, %c0_i32_1, %c0_i32_2 : i32, i32, i32, i32
  }
  func.func @transform_5(%arg0: i32) -> (i32, i32, i32) {
    %c0_i32 = arith.constant 0 : i32
    %c0_i32_0 = arith.constant 0 : i32
    %c0_i32_1 = arith.constant 0 : i32
    %c0_i32_2 = arith.constant 0 : i32
    return %c0_i32, %c0_i32_0, %c0_i32_1 : i32, i32, i32
  }
  func.func @transform_6(%arg0: i32) -> (i32, i32, i32) {
    %c0_i32 = arith.constant 0 : i32
    %c0_i32_0 = arith.constant 0 : i32
    %c0_i32_1 = arith.constant 0 : i32
    %c0_i32_2 = arith.constant 0 : i32
    return %c0_i32, %c0_i32_0, %c0_i32_1 : i32, i32, i32
  }
  func.func @transform_7(%arg0: i32) -> (i32, i32, i32) {
    %c0_i32 = arith.constant 0 : i32
    %c0_i32_0 = arith.constant 0 : i32
    %c0_i32_1 = arith.constant 0 : i32
    %c0_i32_2 = arith.constant 0 : i32
    return %c0_i32, %c0_i32_0, %c0_i32_1 : i32, i32, i32
  }
  func.func @transform_8(%arg0: i32) -> (i32, i32, i32) {
    %c0_i32 = arith.constant 0 : i32
    %c0_i32_0 = arith.constant 0 : i32
    %c0_i32_1 = arith.constant 0 : i32
    %c0_i32_2 = arith.constant 0 : i32
    return %c0_i32, %c0_i32_0, %c0_i32_1 : i32, i32, i32
  }
  func.func @transform_9(%arg0: i32) -> (i32, i32, i32) {
    %c0_i32 = arith.constant 0 : i32
    %c0_i32_0 = arith.constant 0 : i32
    %c0_i32_1 = arith.constant 0 : i32
    %c0_i32_2 = arith.constant 0 : i32
    return %c0_i32, %c0_i32_0, %c0_i32_1 : i32, i32, i32
  }
  func.func @transform_10(%arg0: i32) -> (i32, i32) {
    %c0_i32 = arith.constant 0 : i32
    %c0_i32_0 = arith.constant 0 : i32
    return %c0_i32, %arg0 : i32, i32
  }
  func.func @transform_11(%arg0: i32) -> (i32, i32) {
    %c0_i32 = arith.constant 0 : i32
    %c0_i32_0 = arith.constant 0 : i32
    return %c0_i32, %arg0 : i32, i32
  }
}

</mosaic_0001>

<bundles_post_ra>
// kernel: tpu_custom_call.1
= control target key start
LH: loop header
LB: loop body
LE: loop exit
PB: predicated region body
PF: predicated region fallthrough
CT: control target
= control target key end

     0   :  { %17 = vsyncpa [#allocation3], 0  ;;  %s2593_s0 = inlined_call_operand.hbm [shape: f32[16,128], index: 0, kind: input, shape index: {}, may-alias: {0,10}]   ;;  %s2594_s1 = inlined_call_operand.vmem [shape: f32[3,32,16], index: 1, kind: input, shape index: {}]   ;;  %s2595_s2 = inlined_call_operand.vmem [shape: f32[3,32,1], index: 2, kind: input, shape index: {}]   ;;  %s2596_s3 = inlined_call_operand.vmem [shape: f32[3,1,32,32], index: 3, kind: input, shape index: {}]   ;;  %s2597_s4 = inlined_call_operand.vmem [shape: f32[3,1,32,1], index: 4, kind: input, shape index: {}]   ;;  %s2598_s5 = inlined_call_operand.vmem [shape: f32[3,32,32], index: 5, kind: input, shape index: {}]   ;;  %s2599_s6 = inlined_call_operand.vmem [shape: f32[3,32,1], index: 6, kind: input, shape index: {}]   ;;  %s2600_s7 = inlined_call_operand.vmem [shape: f32[3,16,16], index: 7, kind: input, shape index: {}]   ;;  %s2601_s8 = inlined_call_operand.vmem [shape: f32[3,16,1], index: 8, kind: input, shape index: {}]   ;;  %s2602_s9 = inlined_call_operand.vmem [shape: f32[3,1,1], index: 9, kind: input, shape index: {}]   ;;  %s2603_s10 = inlined_call_operand.hbm [shape: f32[16,128], index: 10, kind: output, shape index: {0}, may-alias: {0,10}]   ;;  %s2604_s11 = inlined_call_operand.hbm [shape: f32[1,128], index: 11, kind: output, shape index: {1}]  }
   0x1   :  { %18 = vsyncpa [#allocation4], 0 }
   0x2   :  { %19 = vsyncpa [#allocation7], 0  ;;  %s2125_s17 = smov [#allocation2]   ;;  %s2053_s21 = scalar_lea.hbm %s2593_s0, 256 }
   0x3   :  { %s25_s18 = sshll.u32 %s2125_s17, 4  ;;  %p2054_p0 = scmp.ne.s32.totalorder %s2593_s0, %s2053_s21  ;;  %s26_s18 = int_to_ptr.vmem [resolvable:$true] %s25_s18 }
   0x4   :  { %p2057_p1 = scmp.lt.u32.totalorder %s2053_s21, %s2593_s0 }
   0x6   :  { %p2059_p2 = pnand %p2057_p1, %p2054_p0 }
   0x8   :  { %2062 = shalt.err (!%p2059_p2)
}
   0x9   :  { %s2063_s26 = scalar_lea.vmem %s26_s18, 256  ;;  %p2068_p4 = scmp.lt.s32.totalorder %s26_s18, %s26_s18 }
   0xa   :  { %p2064_p3 = scmp.ne.s32.totalorder %s26_s18, %s2063_s26  ;;  %p2069_p5 = scmp.lt.s32.totalorder %s2063_s26, %s2063_s26 }
   0xc   :  { %p2070_p6 = por %p2069_p5, %p2068_p4 }
   0xe   :  { %p2071_p7 = pnand %p2070_p6, %p2064_p3 }
  0x10   :  { %2074 = shalt.err (!%p2071_p7)
}
  0x11   :  { %s2126_s27 = smov 128   ;;  %s2127_s28 = smov 8  }
  0x12   :  { %31 = dma.hbm_to_vmem [thread:$0]  %s2593_s0, 256, %s26_s18, [#allocation3], %s2126_s27, %s2126_s27, %s2127_s28  }
  0x13   :  { %2119 = dma.done.wait [#allocation3], 256  }
  0x14   :  { %2120 = vsyncadd [#allocation3], 4294967040  ;;  %v2128_v0 = vmov 0   ;;  %vm83_vm0 = vcmask 130048   ;;  %v59_v1 = vld [vmem:[%s2595_s2] sm:$0xff]  ;;  %v2211_v3 = vld [vmem:[#allocation2 + $0x8] sm:$0xff] }
  0x15   :  { %2027 = vset.pattern.permute.xlu0 %v2128_v0  ;;  %2028 = vset.pattern.permute.xlu1 %v2128_v0  ;;  %v2209_v2 = vld [vmem:[#allocation2] sm:$0xff]  ;;  %v60_v6 = vld [vmem:[%s2595_s2 + $0x8] sm:$0xff]  ;;  %v61_v7 = vld [vmem:[%s2595_s2 + $0x10] sm:$0xff]  ;;  %vm213_vm1 = vcmask 261120   ;;  %s2129_s18 = smov [#allocation6]  }
  0x16   :  { %65 = vperm.xlu0 %2027, %v59_v1   ;;  %v1949_v4 = vpack.c.bf16 %v2211_v3, %v2209_v2  ;;  %v55_v5 = vld [vmem:[%s2594_s1] sm:$0xff]  ;;  %75 = vperm.xlu1 %2028, %v61_v7   ;;  %v56_v8 = vld [vmem:[%s2594_s1 + $0x8] sm:$0xff]  ;;  %v62_v9 = vld [vmem:[%s2595_s2 + $0x18] sm:$0xff] }
  0x17   :  { %1818 = vmatprep.mubr.msk.f32.mxu0 %vm83_vm0, %v55_v5  ;;  %v57_v10 = vld [vmem:[%s2594_s1 + $0x10] sm:$0xff]  ;;  %v189_v11 = vld [vmem:[%s2597_s4] sm:$0xff]  ;;  %v58_v12 = vld [vmem:[%s2594_s1 + $0x18] sm:$0xff] }
  0x18   :  { %1950 = vmatprep.subr.bf16.mxu0 %v1949_v4  ;;  %v190_v13 = vld [vmem:[%s2597_s4 + $0x8] sm:$0xff]  ;;  %v191_v14 = vld [vmem:[%s2597_s4 + $0x10] sm:$0xff]  ;;  %v192_v15 = vld [vmem:[%s2597_s4 + $0x18] sm:$0xff] }
  0x19   :  { %1952 = vmatpush3.bf16.msra.mxu0 %v1949_v4  ;;  %v319_v16 = vld [vmem:[%s2599_s6] sm:$0xff]  ;;  %v320_v17 = vld [vmem:[%s2599_s6 + $0x8] sm:$0xff]  ;;  %v321_v18 = vld [vmem:[%s2599_s6 + $0x10] sm:$0xff] }
  0x1a   :  { %70 = vperm.xlu0 %2027, %v60_v6   ;;  %80 = vperm.xlu1 %2028, %v62_v9   ;;  %v322_v19 = vld [vmem:[%s2599_s6 + $0x18] sm:$0xff]  ;;  %v473_v20 = vld [vmem:[%s2601_s8] sm:$0xff]  ;;  %v474_v21 = vld [vmem:[%s2601_s8 + $0x8] sm:$0xff] }
  0x1b   :  { %v1654_v22 = vld [vmem:[%s2595_s2 + $0x20] sm:$0xff]  ;;  %v1655_v23 = vld [vmem:[%s2595_s2 + $0x28] sm:$0xff]  ;;  %v1656_v24 = vld [vmem:[%s2595_s2 + $0x30] sm:$0xff] }
  0x1c   :  { %1819 = vmatmul.mubr.msk.f32.vlgmr.msra.gmra.mrb[0].mxu0 %vm83_vm0, %v56_v8  ;;  %v1657_v25 = vld [vmem:[%s2595_s2 + $0x38] sm:$0xff]  ;;  %v1666_v26 = vld [vmem:[%s2597_s4 + $0x20] sm:$0xff]  ;;  %v1667_v27 = vld [vmem:[%s2597_s4 + $0x28] sm:$0xff] }
  0x1d   :  { %1821 = vmatprep.mubr.msk.f32.mxu0 %vm83_vm0, %v57_v10  ;;  %v1668_v28 = vld [vmem:[%s2597_s4 + $0x30] sm:$0xff]  ;;  %v1669_v29 = vld [vmem:[%s2597_s4 + $0x38] sm:$0xff]  ;;  %v1678_v30 = vld [vmem:[%s2599_s6 + $0x20] sm:$0xff] }
  0x1e   :  { %195 = vperm.xlu0 %2027, %v189_v11   ;;  %200 = vperm.xlu1 %2028, %v190_v13   ;;  %v1679_v31 = vld [vmem:[%s2599_s6 + $0x28] sm:$0xff]  ;;  %v1680_v32 = vld [vmem:[%s2599_s6 + $0x30] sm:$0xff]  ;;  %v1681_v33 = vld [vmem:[%s2599_s6 + $0x38] sm:$0xff] }
  0x1f   :  { %v1689_v34 = vld [vmem:[%s2601_s8 + $0x10] sm:$0xff]  ;;  %v1690_v35 = vld [vmem:[%s2601_s8 + $0x18] sm:$0xff]  ;;  %v1697_v36 = vld [vmem:[%s2595_s2 + $0x40] sm:$0xff] }
  0x20   :  { %1822 = vmatmul.mubr.msk.f32.gmra.mrb[2].mxu0 %vm83_vm0, %v58_v12  ;;  %v1698_v37 = vld [vmem:[%s2595_s2 + $0x48] sm:$0xff]  ;;  %v1699_v38 = vld [vmem:[%s2595_s2 + $0x50] sm:$0xff]  ;;  %v1700_v39 = vld [vmem:[%s2595_s2 + $0x58] sm:$0xff]  ;;  %s1623_s2 = sshll.u32 %s2129_s18, 4  ;;  %s1624_s2 = int_to_ptr.vmem [resolvable:$true] %s1623_s2 }
  0x21   :  { %v1709_v40 = vld [vmem:[%s2597_s4 + $0x40] sm:$0xff]  ;;  %v1710_v41 = vld [vmem:[%s2597_s4 + $0x48] sm:$0xff]  ;;  %v1711_v42 = vld [vmem:[%s2597_s4 + $0x50] sm:$0xff]  ;;  %s2075_s19 = scalar_lea.vmem %s1624_s2, 16  ;;  %s2079_s20 = scalar_lea.vmem %s1624_s2, 32 }
  0x22   :  { %205 = vperm.xlu0 %2027, %v191_v14   ;;  %210 = vperm.xlu1 %2028, %v192_v15   ;;  %v1712_v43 = vld [vmem:[%s2597_s4 + $0x58] sm:$0xff]  ;;  %v1721_v44 = vld [vmem:[%s2599_s6 + $0x40] sm:$0xff]  ;;  %v1722_v45 = vld [vmem:[%s2599_s6 + $0x48] sm:$0xff]  ;;  %p2076_p8 = scmp.ne.s32.totalorder %s1624_s2, %s2075_s19  ;;  %p2080_p9 = scmp.lt.s32.totalorder %s1624_s2, %s1624_s2 }
  0x23   :  { %v1723_v46 = vld [vmem:[%s2599_s6 + $0x50] sm:$0xff]  ;;  %v1724_v47 = vld [vmem:[%s2599_s6 + $0x58] sm:$0xff]  ;;  %v460_v48 = vld [vmem:[%s2602_s9] sm:$0x1]  ;;  %p2081_p10 = scmp.lt.s32.totalorder %s2079_s20, %s2075_s19 }
  0x24   :  { %v1686_v49 = vld [vmem:[%s2602_s9 + $0x1] sm:$0x1]  ;;  %v1729_v50 = vld [vmem:[%s2602_s9 + $0x2] sm:$0x1]  ;;  %v1733_v52 = vld [vmem:[%s2601_s8 + $0x28] sm:$0xff] }
  0x25   :  { %v1732_v51 = vld [vmem:[%s2601_s8 + $0x20] sm:$0xff]  ;;  %v186_v10 = vld [vmem:[%s2596_s3 + $0x8] sm:$0xff]  ;;  %v187_v11 = vld [vmem:[%s2596_s3 + $0x10] sm:$0xff]  ;;  %p2082_p11 = por %p2081_p10, %p2080_p9 }
  0x26   :  { %325 = vperm.xlu0 %2027, %v319_v16   ;;  %330 = vperm.xlu1 %2028, %v320_v17   ;;  %v185_v53 = vld [vmem:[%s2596_s3] sm:$0xff]  ;;  %v188_v12 = vld [vmem:[%s2596_s3 + $0x18] sm:$0xff] }
  0x27   :  { %1832 = vmatprep.mubr.msk.f32.mxu1 %vm213_vm1, %v185_v53  ;;  %v315_v13 = vld [vmem:[%s2598_s5] sm:$0xff]  ;;  %p2083_p12 = pnand %p2082_p11, %p2076_p8 }
  0x28   :  { %1846 = vmatprep.mubr.msk.f32.mxu0 %vm213_vm1, %v315_v13 }
  0x2a   :  { %335 = vperm.xlu0 %2027, %v321_v18   ;;  %340 = vperm.xlu1 %2028, %v322_v19  }
  0x2e   :  { %477 = vperm.xlu0 %2027, %v473_v20   ;;  %482 = vperm.xlu1 %2028, %v474_v21  }
  0x32   :  { %578 = vperm.xlu0 %2027, %v1654_v22   ;;  %583 = vperm.xlu1 %2028, %v1655_v23  }
  0x36   :  { %588 = vperm.xlu0 %2027, %v1656_v24   ;;  %593 = vperm.xlu1 %2028, %v1657_v25  }
  0x3a   :  { %709 = vperm.xlu0 %2027, %v1666_v26   ;;  %714 = vperm.xlu1 %2028, %v1667_v27  }
  0x3e   :  { %719 = vperm.xlu0 %2027, %v1668_v28   ;;  %724 = vperm.xlu1 %2028, %v1669_v29  }
  0x42   :  { %840 = vperm.xlu0 %2027, %v1678_v30   ;;  %845 = vperm.xlu1 %2028, %v1679_v31  }
  0x46   :  { %850 = vperm.xlu0 %2027, %v1680_v32   ;;  %855 = vperm.xlu1 %2028, %v1681_v33   ;;  %v316_v32 = vld [vmem:[%s2598_s5 + $0x8] sm:$0xff]  ;;  %v317_v33 = vld [vmem:[%s2598_s5 + $0x10] sm:$0xff] }
  0x4a   :  { %995 = vperm.xlu0 %2027, %v1689_v34   ;;  %1000 = vperm.xlu1 %2028, %v1690_v35   ;;  %v318_v34 = vld [vmem:[%s2598_s5 + $0x18] sm:$0xff]  ;;  %v471_v35 = vld [vmem:[%s2600_s7] sm:$0xff] }
  0x4e   :  { %1096 = vperm.xlu0 %2027, %v1697_v36   ;;  %1101 = vperm.xlu1 %2028, %v1698_v37  }
  0x52   :  { %1106 = vperm.xlu0 %2027, %v1699_v38   ;;  %1111 = vperm.xlu1 %2028, %v1700_v39  }
  0x56   :  { %1227 = vperm.xlu0 %2027, %v1709_v40   ;;  %1232 = vperm.xlu1 %2028, %v1710_v41  }
  0x5a   :  { %1237 = vperm.xlu0 %2027, %v1711_v42   ;;  %1242 = vperm.xlu1 %2028, %v1712_v43  }
  0x5e   :  { %1358 = vperm.xlu0 %2027, %v1721_v44   ;;  %1363 = vperm.xlu1 %2028, %v1722_v45  }
  0x62   :  { %1368 = vperm.xlu0 %2027, %v1723_v46   ;;  %1373 = vperm.xlu1 %2028, %v1724_v47  }
  0x66   :  { %463 = vperm.xlu0 %2027, %v460_v48   ;;  %979 = vperm.xlu1 %2028, %v1686_v49  }
  0x6a   :  { %1497 = vperm.xlu0 %2027, %v1729_v50   ;;  %1513 = vperm.xlu1 %2028, %v1732_v51  }
  0x6e   :  { %1518 = vperm.xlu0 %2027, %v1733_v52  }
  0x95   :  { %v66_v54 = vpop.permute.xlu0 %65  ;;  %v76_v55 = vpop.permute.xlu1 %75 }
  0x99   :  { %v71_v56 = vpop.permute.xlu0 %70  ;;  %v81_v62 = vpop.permute.xlu1 %80 }
  0x9d   :  { %v201_v14 = vpop.permute.xlu1 %200  ;;  %v196_v15 = vpop.permute.xlu0 %195 }
  0xa1   :  { %v211_v21 = vpop.permute.xlu1 %210  ;;  %v206_v24 = vpop.permute.xlu0 %205 }
  0xa5   :  { %v331_v36 = vpop.permute.xlu1 %330  ;;  %v326_v38 = vpop.permute.xlu0 %325 }
  0xa9   :  { %v341_v52 = vpop.permute.xlu1 %340 }
  0xef   :  { %v1820_v57 = vpop.f32.mrb[0].mxu0 }
  0xf0   :  { %v168_v58 = vadd.f32 %v1820_v57, %v71_v56  ;;  %v162_v59 = vpop.f32.mrb[1].mxu0 }
  0xf1   :  { %v163_v60 = vadd.f32 %v162_v59, %v66_v54  ;;  %v336_v54 = vpop.permute.xlu0 %335 }
  0xf2   :  { %v182_v61 = vmax.f32 %v168_v58, 0.0 }
  0xf3   :  { %v181_v63 = vmax.f32 %v163_v60, 0.0  ;;  %v1823_v0 = vpop.f32.mrb[2].mxu0 }
  0xf4   :  { %v178_v1 = vadd.f32 %v1823_v0, %v81_v62  ;;  %v172_v4 = vpop.f32.mrb[3].mxu0  ;;  %v472_v62 = vld [vmem:[%s2600_s7 + $0x8] sm:$0xff] }
  0xf5   :  { %v173_v5 = vadd.f32 %v172_v4, %v76_v55  ;;  %v1953_v6 = vpack.c.bf16 %v182_v61, %v181_v63  ;;  %v1650_v63 = vld [vmem:[%s2594_s1 + $0x20] sm:$0xff] }
  0xf6   :  { %v184_v7 = vmax.f32 %v178_v1, 0.0 }
  0xf7   :  { %v183_v8 = vmax.f32 %v173_v5, 0.0  ;;  %1954 = vmatprep.subr.bf16.mxu1 %v1953_v6 }
  0xf8   :  { %1956 = vmatpush3.bf16.msra.mxu1 %v1953_v6 }
  0xf9   :  { %v1957_v9 = vpack.c.bf16 %v184_v7, %v183_v8  ;;  %v1651_v7 = vld [vmem:[%s2594_s1 + $0x28] sm:$0xff]  ;;  %v1652_v8 = vld [vmem:[%s2594_s1 + $0x30] sm:$0xff] }
  0xfb   :  { %1958 = vmatprep.subr.bf16.mxu1 %v1957_v9 }
  0xfc   :  { %1960 = vmatpush3.bf16.msra.mxu1 %v1957_v9  ;;  %v1653_v9 = vld [vmem:[%s2594_s1 + $0x38] sm:$0xff] }
  0xff   :  { %1833 = vmatmul.mubr.msk.f32.vlgmr.msra.gmra.mrb[0].mxu1 %vm213_vm1, %v186_v10  ;;  %v1662_v10 = vld [vmem:[%s2596_s3 + $0x20] sm:$0xff] }
 0x100   :  { %1835 = vmatprep.mubr.msk.f32.mxu1 %vm213_vm1, %v187_v11 }
 0x103   :  { %1836 = vmatmul.mubr.msk.f32.gmra.mrb[2].mxu1 %vm213_vm1, %v188_v12 }
 0x104   :  { %1856 = vmatprep.mubr.msk.f32.mxu1 %vm83_vm0, %v471_v35 }
 0x1d2   :  { %v1834_v16 = vpop.f32.mrb[0].mxu1 }
 0x1d3   :  { %v298_v17 = vadd.f32 %v1834_v16, %v201_v14  ;;  %v292_v18 = vpop.f32.mrb[1].mxu1 }
 0x1d4   :  { %v293_v19 = vadd.f32 %v292_v18, %v196_v15 }
 0x1d5   :  { %v312_v20 = vmax.f32 %v298_v17, 0.0 }
 0x1d6   :  { %v311_v22 = vmax.f32 %v293_v19, 0.0  ;;  %v1837_v23 = vpop.f32.mrb[2].mxu1 }
 0x1d7   :  { %v308_v25 = vadd.f32 %v1837_v23, %v211_v21  ;;  %v302_v26 = vpop.f32.mrb[3].mxu1 }
 0x1d8   :  { %v1961_v27 = vpack.c.bf16 %v312_v20, %v311_v22  ;;  %v303_v28 = vadd.f32 %v302_v26, %v206_v24 }
 0x1d9   :  { %v314_v29 = vmax.f32 %v308_v25, 0.0 }
 0x1da   :  { %v313_v30 = vmax.f32 %v303_v28, 0.0  ;;  %1962 = vmatprep.subr.bf16.mxu0 %v1961_v27 }
 0x1db   :  { %1964 = vmatpush3.bf16.msra.mxu0 %v1961_v27 }
 0x1dc   :  { %v1965_v31 = vpack.c.bf16 %v314_v29, %v313_v30  ;;  %v1663_v29 = vld [vmem:[%s2596_s3 + $0x28] sm:$0xff]  ;;  %v1664_v30 = vld [vmem:[%s2596_s3 + $0x30] sm:$0xff] }
 0x1de   :  { %1966 = vmatprep.subr.bf16.mxu0 %v1965_v31 }
 0x1df   :  { %1968 = vmatpush3.bf16.msra.mxu0 %v1965_v31  ;;  %v1665_v31 = vld [vmem:[%s2596_s3 + $0x38] sm:$0xff] }
 0x1e2   :  { %1847 = vmatmul.mubr.msk.f32.vlgmr.msra.gmra.mrb[4].mxu0 %vm213_vm1, %v316_v32  ;;  %v1674_v32 = vld [vmem:[%s2598_s5 + $0x20] sm:$0xff] }
 0x1e3   :  { %1849 = vmatprep.mubr.msk.f32.mxu0 %vm213_vm1, %v317_v33 }
 0x1e6   :  { %1850 = vmatmul.mubr.msk.f32.gmra.mrb[6].mxu0 %vm213_vm1, %v318_v34 }
 0x1e7   :  { %1863 = vmatprep.mubr.msk.f32.mxu0 %vm83_vm0, %v1650_v63 }
 0x2b5   :  { %v1848_v37 = vpop.f32.mrb[4].mxu0 }
 0x2b6   :  { %v427_v39 = vadd.f32 %v1848_v37, %v331_v36  ;;  %v421_v40 = vpop.f32.mrb[5].mxu0 }
 0x2b7   :  { %v422_v41 = vadd.f32 %v421_v40, %v326_v38 }
 0x2b8   :  { %2029 = vtanh.f32 %v427_v39 }
 0x2b9   :  { %2031 = vtanh.f32 %v422_v41  ;;  %v1851_v42 = vpop.f32.mrb[6].mxu0 }
 0x2ba   :  { %v431_v43 = vpop.f32.mrb[7].mxu0  ;;  %v437_v55 = vadd.f32 %v1851_v42, %v341_v52  ;;  %v1675_v52 = vld [vmem:[%s2598_s5 + $0x28] sm:$0xff] }
 0x2bb   :  { %v432_v57 = vadd.f32 %v431_v43, %v336_v54  ;;  %v1677_v54 = vld [vmem:[%s2598_s5 + $0x38] sm:$0xff] }
 0x2c2   :  { %v2030_v44 = vpop.eup %2029 }
 0x2c3   :  { %v2032_v45 = vpop.eup %2031  ;;  %v443_v46 = vmul.f32 2.0, %v2030_v44 }
 0x2c4   :  { %v442_v47 = vmul.f32 2.0, %v2032_v45 }
 0x2c5   :  { %v446_v48 = vmul.f32 1.442695, %v443_v46 }
 0x2c6   :  { %v444_v49 = vmul.f32 1.442695, %v442_v47  ;;  %v2399_v50 = vadd.f32 %v443_v46, %v442_v47 }
 0x2c7   :  { %2033 = vpow2.f32 %v446_v48 }
 0x2c8   :  { %2035 = vpow2.f32 %v444_v49 }
 0x2d1   :  { %v2034_v51 = vpop.eup %2033 }
 0x2d2   :  { %v2036_v53 = vpop.eup %2035  ;;  %v449_v56 = vmul.f32 %v2034_v51, %v2211_v3  ;;  %v483_v3 = vpop.permute.xlu1 %482 }
 0x2d3   :  { %v448_v58 = vmul.f32 %v2036_v53, %v2209_v2  ;;  %v478_v2 = vpop.permute.xlu0 %477  ;;  %v1676_v53 = vld [vmem:[%s2598_s5 + $0x30] sm:$0xff] }
 0x2d4   :  { %v451_v59 = vadd.f32 %v449_v56, %v437_v55  ;;  %v1687_v55 = vld [vmem:[%s2600_s7 + $0x10] sm:$0xff] }
 0x2d5   :  { %v450_v60 = vadd.f32 %v448_v58, %v432_v57 }
 0x2d6   :  { %v584_v11 = vpop.permute.xlu1 %583 }
 0x2d7   :  { %v1969_v61 = vpack.c.bf16 %v451_v59, %v450_v60  ;;  %v579_v12 = vpop.permute.xlu0 %578 }
 0x2d9   :  { %1970 = vmatprep.subr.bf16.mxu1 %v1969_v61 }
 0x2da   :  { %1972 = vmatpush3.bf16.msra.mxu1 %v1969_v61  ;;  %v594_v18 = vpop.permute.xlu1 %593 }
 0x2db   :  { %v589_v21 = vpop.permute.xlu0 %588 }
 0x2dd   :  { %1857 = vmatmul.mubr.msk.f32.vlgmr.msra.gmra.mrb[4].mxu1 %vm83_vm0, %v472_v62 }
 0x2de   :  { %1877 = vmatprep.mubr.msk.f32.mxu1 %vm213_vm1, %v1662_v10  ;;  %v715_v33 = vpop.permute.xlu1 %714 }
 0x2df   :  { %v710_v34 = vpop.permute.xlu0 %709 }
 0x2e2   :  { %v725_v40 = vpop.permute.xlu1 %724 }
 0x2e3   :  { %v720_v43 = vpop.permute.xlu0 %719 }
 0x2e6   :  { %v846_v61 = vpop.permute.xlu1 %845 }
 0x2e7   :  { %v841_v56 = vpop.permute.xlu0 %840 }
 0x2eb   :  { %v851_v57 = vpop.permute.xlu0 %850 }
 0x2ef   :  { %v2465_v58 = vpop.permute.xlu0 %995 }
 0x2f3   :  { %v2467_v59 = vpop.permute.xlu0 %1096 }
 0x2f7   :  { %v2469_v60 = vpop.permute.xlu0 %1106 }
 0x3b0   :  { %v1858_v0 = vpop.f32.mrb[4].mxu1 }
 0x3b1   :  { %v2411_v1 = vadd.f32 %v1858_v0, %v483_v3  ;;  %v557_v4 = vpop.f32.mrb[5].mxu1  ;;  %v2471_v0 = vpop.permute.xlu0 %1227 }
 0x3b2   :  { %v2413_v5 = vadd.f32 %v557_v4, %v478_v2 }
 0x3b4   :  { %v1973_v6 = vpack.c.bf16 %v2411_v1, %v2413_v5 }
 0x3b6   :  { %1974 = vmatprep.subr.bf16.mxu0 %v1973_v6 }
 0x3b7   :  { %1976 = vmatpush3.bf16.msra.mxu0 %v1973_v6  ;;  %v453_v6 = vrot.slane %v2399_v50, 4 }
 0x3ba   :  { %1864 = vmatmul.mubr.msk.f32.vlgmr.msra.gmra.mrb[8].mxu0 %vm83_vm0, %v1651_v7 }
 0x3bb   :  { %1866 = vmatprep.mubr.msk.f32.mxu0 %vm83_vm0, %v1652_v8  ;;  %v2474_v8 = vpop.permute.xlu0 %1237 }
 0x3be   :  { %1867 = vmatmul.mubr.msk.f32.gmra.mrb[10].mxu0 %vm83_vm0, %v1653_v9  ;;  %v454_v9 = vadd.f32 %v453_v6, %v2399_v50 }
 0x3bf   :  { %1891 = vmatprep.mubr.msk.f32.mxu0 %vm213_vm1, %v1674_v32 }
 0x48d   :  { %v1865_v13 = vpop.f32.mrb[8].mxu0 }
 0x48e   :  { %v680_v14 = vadd.f32 %v1865_v13, %v584_v11  ;;  %v674_v15 = vpop.f32.mrb[9].mxu0  ;;  %v455_v11 = vrot.slane %v454_v9, 2  ;;  %v2477_v13 = vpop.permute.xlu0 %1358 }
 0x48f   :  { %v675_v16 = vadd.f32 %v674_v15, %v579_v12  ;;  %v466_v15 = vlaneseq }
 0x490   :  { %v694_v17 = vmax.f32 %v680_v14, 0.0 }
 0x491   :  { %v693_v19 = vmax.f32 %v675_v16, 0.0  ;;  %v1868_v20 = vpop.f32.mrb[10].mxu0 }
 0x492   :  { %v690_v22 = vadd.f32 %v1868_v20, %v594_v18  ;;  %v684_v23 = vpop.f32.mrb[11].mxu0  ;;  %v456_v18 = vadd.f32 %v455_v11, %v454_v9 }
 0x493   :  { %v1977_v24 = vpack.c.bf16 %v694_v17, %v693_v19  ;;  %v685_v25 = vadd.f32 %v684_v23, %v589_v21  ;;  %v467_v21 = vshrl.u32 %v466_v15, 7  ;;  %v2479_v23 = vpop.permute.xlu0 %1368  ;;  %v1707_v15 = vld [vmem:[%s2596_s3 + $0x50] sm:$0xff] }
 0x494   :  { %v696_v26 = vmax.f32 %v690_v22, 0.0 }
 0x495   :  { %v695_v27 = vmax.f32 %v685_v25, 0.0  ;;  %1978 = vmatprep.subr.bf16.mxu1 %v1977_v24  ;;  %v2481_v25 = vsub.s32 0, %v467_v21 }
 0x496   :  { %1980 = vmatpush3.bf16.msra.mxu1 %v1977_v24  ;;  %v457_v24 = vrot.slane %v456_v18, 1 }
 0x497   :  { %v1981_v28 = vpack.c.bf16 %v696_v26, %v695_v27 }
 0x498   :  { %v458_v27 = vadd.f32 %v457_v24, %v456_v18 }
 0x499   :  { %1982 = vmatprep.subr.bf16.mxu1 %v1981_v28 }
 0x49a   :  { %1984 = vmatpush3.bf16.msra.mxu1 %v1981_v28 }
 0x49d   :  { %1878 = vmatmul.mubr.msk.f32.vlgmr.msra.gmra.mrb[6].mxu1 %vm213_vm1, %v1663_v29  ;;  %v464_v29 = vpop.permute.xlu0 %463 }
 0x49e   :  { %1880 = vmatprep.mubr.msk.f32.mxu1 %vm213_vm1, %v1664_v30  ;;  %v469_v30 = vrot.slane %v464_v29, %v2481_v25 }
 0x4a1   :  { %1881 = vmatmul.mubr.msk.f32.gmra.mrb[8].mxu1 %vm213_vm1, %v1665_v31 }
 0x4a2   :  { %1901 = vmatprep.mubr.msk.f32.mxu1 %vm83_vm0, %v1687_v55  ;;  %v1705_v55 = vld [vmem:[%s2596_s3 + $0x40] sm:$0xff] }
 0x570   :  { %v1879_v35 = vpop.f32.mrb[6].mxu1 }
 0x571   :  { %v811_v36 = vadd.f32 %v1879_v35, %v715_v33  ;;  %v805_v37 = vpop.f32.mrb[7].mxu1  ;;  %v856_v33 = vpop.permute.xlu1 %855 }
 0x572   :  { %v806_v38 = vadd.f32 %v805_v37, %v710_v34  ;;  %v470_v37 = vadd.f32 %v469_v30, %v458_v27 }
 0x573   :  { %v825_v39 = vmax.f32 %v811_v36, 0.0 }
 0x574   :  { %v824_v41 = vmax.f32 %v806_v38, 0.0  ;;  %v1882_v42 = vpop.f32.mrb[8].mxu1 }
 0x575   :  { %v821_v44 = vadd.f32 %v1882_v42, %v725_v40  ;;  %v815_v45 = vpop.f32.mrb[9].mxu1 }
 0x576   :  { %v1985_v46 = vpack.c.bf16 %v825_v39, %v824_v41  ;;  %v816_v47 = vadd.f32 %v815_v45, %v720_v43  ;;  %v1688_v45 = vld [vmem:[%s2600_s7 + $0x18] sm:$0xff] }
 0x577   :  { %v827_v48 = vmax.f32 %v821_v44, 0.0 }
 0x578   :  { %v826_v49 = vmax.f32 %v816_v47, 0.0  ;;  %1986 = vmatprep.subr.bf16.mxu0 %v1985_v46 }
 0x579   :  { %1988 = vmatpush3.bf16.msra.mxu0 %v1985_v46 }
 0x57a   :  { %v1989_v51 = vpack.c.bf16 %v827_v48, %v826_v49 }
 0x57c   :  { %1990 = vmatprep.subr.bf16.mxu0 %v1989_v51 }
 0x57d   :  { %1992 = vmatpush3.bf16.msra.mxu0 %v1989_v51 }
 0x580   :  { %1892 = vmatmul.mubr.msk.f32.vlgmr.msra.gmra.mrb[12].mxu0 %vm213_vm1, %v1675_v52  ;;  %v1694_v52 = vld [vmem:[%s2594_s1 + $0x48] sm:$0xff] }
 0x581   :  { %1894 = vmatprep.mubr.msk.f32.mxu0 %vm213_vm1, %v1676_v53  ;;  %v1695_v53 = vld [vmem:[%s2594_s1 + $0x50] sm:$0xff] }
 0x584   :  { %1895 = vmatmul.mubr.msk.f32.gmra.mrb[14].mxu0 %vm213_vm1, %v1677_v54  ;;  %v1696_v54 = vld [vmem:[%s2594_s1 + $0x58] sm:$0xff] }
 0x653   :  { %v1893_v62 = vpop.f32.mrb[12].mxu0 }
 0x654   :  { %v942_v63 = vadd.f32 %v1893_v62, %v846_v61  ;;  %v936_v3 = vpop.f32.mrb[13].mxu0 }
 0x655   :  { %v937_v2 = vadd.f32 %v936_v3, %v841_v56 }
 0x656   :  { %2037 = vtanh.f32 %v942_v63 }
 0x657   :  { %2039 = vtanh.f32 %v937_v2  ;;  %v1896_v4 = vpop.f32.mrb[14].mxu0 }
 0x658   :  { %v946_v7 = vpop.f32.mrb[15].mxu0  ;;  %v952_v35 = vadd.f32 %v1896_v4, %v856_v33 }
 0x659   :  { %v947_v39 = vadd.f32 %v946_v7, %v851_v57 }
 0x660   :  { %v2038_v10 = vpop.eup %2037 }
 0x661   :  { %v2040_v12 = vpop.eup %2039  ;;  %v958_v14 = vmul.f32 2.0, %v2038_v10 }
 0x662   :  { %v957_v16 = vmul.f32 2.0, %v2040_v12 }
 0x663   :  { %v961_v17 = vmul.f32 1.442695, %v958_v14 }
 0x664   :  { %v959_v19 = vmul.f32 1.442695, %v957_v16  ;;  %v967_v20 = vadd.f32 %v958_v14, %v957_v16  ;;  %v1717_v16 = vld [vmem:[%s2598_s5 + $0x40] sm:$0xff] }
 0x665   :  { %2041 = vpow2.f32 %v961_v17 }
 0x666   :  { %2043 = vpow2.f32 %v959_v19  ;;  %v968_v22 = vrot.slane %v967_v20, 4 }
 0x668   :  { %v969_v50 = vadd.f32 %v968_v22, %v967_v20 }
 0x66a   :  { %v970_v26 = vrot.slane %v969_v50, 2 }
 0x66c   :  { %v971_v28 = vadd.f32 %v970_v26, %v969_v50 }
 0x66e   :  { %v972_v31 = vrot.slane %v971_v28, 1 }
 0x66f   :  { %v2042_v32 = vpop.eup %2041 }
 0x670   :  { %v2044_v34 = vpop.eup %2043  ;;  %v964_v36 = vmul.f32 %v2042_v32, %v2411_v1  ;;  %v973_v38 = vadd.f32 %v972_v31, %v971_v28  ;;  %v1693_v1 = vld [vmem:[%s2594_s1 + $0x40] sm:$0xff] }
 0x671   :  { %v963_v40 = vmul.f32 %v2044_v34, %v2413_v5  ;;  %1908 = vmatprep.mubr.msk.f32.mxu0 %vm83_vm0, %v1693_v1  ;;  %v1001_v5 = vpop.permute.xlu1 %1000  ;;  %v1719_v34 = vld [vmem:[%s2598_s5 + $0x50] sm:$0xff] }
 0x672   :  { %v966_v41 = vadd.f32 %v964_v36, %v952_v35  ;;  %v2486_v42 = vadd.f32 %v973_v38, %v470_v37  ;;  %v1730_v35 = vld [vmem:[%s2600_s7 + $0x20] sm:$0xff] }
 0x673   :  { %v965_v43 = vadd.f32 %v963_v40, %v947_v39 }
 0x675   :  { %v1993_v44 = vpack.c.bf16 %v966_v41, %v965_v43  ;;  %v1102_v56 = vpop.permute.xlu1 %1101 }
 0x677   :  { %1994 = vmatprep.subr.bf16.mxu1 %v1993_v44 }
 0x678   :  { %1996 = vmatpush3.bf16.msra.mxu1 %v1993_v44 }
 0x679   :  { %v1112_v3 = vpop.permute.xlu1 %1111 }
 0x67b   :  { %1902 = vmatmul.mubr.msk.f32.vlgmr.msra.gmra.mrb[10].mxu1 %vm83_vm0, %v1688_v45 }
 0x67c   :  { %1922 = vmatprep.mubr.msk.f32.mxu1 %vm213_vm1, %v1705_v55 }
 0x67d   :  { %v1233_v17 = vpop.permute.xlu1 %1232 }
 0x681   :  { %v1243_v24 = vpop.permute.xlu1 %1242 }
 0x685   :  { %v1364_v36 = vpop.permute.xlu1 %1363 }
 0x74e   :  { %v1903_v46 = vpop.f32.mrb[10].mxu1 }
 0x74f   :  { %v2496_v47 = vadd.f32 %v1903_v46, %v1001_v5  ;;  %v1075_v48 = vpop.f32.mrb[11].mxu1 }
 0x750   :  { %v2499_v49 = vadd.f32 %v1075_v48, %v2465_v58 }
 0x752   :  { %v1997_v51 = vpack.c.bf16 %v2496_v47, %v2499_v49 }
 0x754   :  { %1998 = vmatprep.subr.bf16.mxu0 %v1997_v51 }
 0x755   :  { %2000 = vmatpush3.bf16.msra.mxu0 %v1997_v51 }
 0x758   :  { %1909 = vmatmul.mubr.msk.f32.vlgmr.msra.gmra.mrb[16].mxu0 %vm83_vm0, %v1694_v52 }
 0x759   :  { %1911 = vmatprep.mubr.msk.f32.mxu0 %vm83_vm0, %v1695_v53  ;;  %v1374_v53 = vpop.permute.xlu1 %1373 }
 0x75c   :  { %1912 = vmatmul.mubr.msk.f32.gmra.mrb[18].mxu0 %vm83_vm0, %v1696_v54 }
 0x75d   :  { %1936 = vmatprep.mubr.msk.f32.mxu0 %vm213_vm1, %v1717_v16 }
 0x82b   :  { %v1910_v57 = vpop.f32.mrb[16].mxu0 }
 0x82c   :  { %v1198_v58 = vadd.f32 %v1910_v57, %v1102_v56  ;;  %v1192_v61 = vpop.f32.mrb[17].mxu0  ;;  %v980_v57 = vpop.permute.xlu1 %979 }
 0x82d   :  { %v1193_v62 = vadd.f32 %v1192_v61, %v2467_v59  ;;  %v1706_v59 = vld [vmem:[%s2596_s3 + $0x48] sm:$0xff] }
 0x82e   :  { %v1212_v63 = vmax.f32 %v1198_v58, 0.0 }
 0x82f   :  { %v1211_v2 = vmax.f32 %v1193_v62, 0.0  ;;  %v1913_v4 = vpop.f32.mrb[18].mxu0 }
 0x830   :  { %v1208_v6 = vadd.f32 %v1913_v4, %v1112_v3  ;;  %v1202_v7 = vpop.f32.mrb[19].mxu0 }
 0x831   :  { %v2001_v9 = vpack.c.bf16 %v1212_v63, %v1211_v2  ;;  %v1203_v10 = vadd.f32 %v1202_v7, %v2469_v60  ;;  %v1708_v60 = vld [vmem:[%s2596_s3 + $0x58] sm:$0xff] }
 0x832   :  { %v1214_v11 = vmax.f32 %v1208_v6, 0.0  ;;  %v1498_v6 = vpop.permute.xlu0 %1497 }
 0x833   :  { %v1213_v12 = vmax.f32 %v1203_v10, 0.0  ;;  %2002 = vmatprep.subr.bf16.mxu1 %v2001_v9  ;;  %v1503_v10 = vrot.slane %v1498_v6, %v2481_v25 }
 0x834   :  { %2004 = vmatpush3.bf16.msra.mxu1 %v2001_v9 }
 0x835   :  { %v2005_v14 = vpack.c.bf16 %v1214_v11, %v1213_v12 }
 0x837   :  { %2006 = vmatprep.subr.bf16.mxu1 %v2005_v14 }
 0x838   :  { %2008 = vmatpush3.bf16.msra.mxu1 %v2005_v14 }
 0x83b   :  { %1923 = vmatmul.mubr.msk.f32.vlgmr.msra.gmra.mrb[12].mxu1 %vm213_vm1, %v1706_v59 }
 0x83c   :  { %1925 = vmatprep.mubr.msk.f32.mxu1 %vm213_vm1, %v1707_v15 }
 0x83f   :  { %1926 = vmatmul.mubr.msk.f32.gmra.mrb[14].mxu1 %vm213_vm1, %v1708_v60 }
 0x840   :  { %1946 = vmatprep.mubr.msk.f32.mxu1 %vm83_vm0, %v1730_v35 }
 0x90e   :  { %v1924_v18 = vpop.f32.mrb[12].mxu1 }
 0x90f   :  { %v1329_v19 = vadd.f32 %v1924_v18, %v1233_v17  ;;  %v1323_v20 = vpop.f32.mrb[13].mxu1 }
 0x910   :  { %v1324_v21 = vadd.f32 %v1323_v20, %v2471_v0  ;;  %v1718_v0 = vld [vmem:[%s2598_s5 + $0x48] sm:$0xff] }
 0x911   :  { %v1343_v22 = vmax.f32 %v1329_v19, 0.0 }
 0x912   :  { %v1342_v50 = vmax.f32 %v1324_v21, 0.0  ;;  %v1927_v26 = vpop.f32.mrb[14].mxu1 }
 0x913   :  { %v1339_v27 = vadd.f32 %v1927_v26, %v1243_v24  ;;  %v1333_v28 = vpop.f32.mrb[15].mxu1 }
 0x914   :  { %v2009_v29 = vpack.c.bf16 %v1343_v22, %v1342_v50  ;;  %v1334_v30 = vadd.f32 %v1333_v28, %v2474_v8  ;;  %v1720_v8 = vld [vmem:[%s2598_s5 + $0x58] sm:$0xff] }
 0x915   :  { %v1345_v31 = vmax.f32 %v1339_v27, 0.0 }
 0x916   :  { %v1344_v32 = vmax.f32 %v1334_v30, 0.0  ;;  %2010 = vmatprep.subr.bf16.mxu0 %v2009_v29 }
 0x917   :  { %2012 = vmatpush3.bf16.msra.mxu0 %v2009_v29 }
 0x918   :  { %v2013_v33 = vpack.c.bf16 %v1345_v31, %v1344_v32 }
 0x91a   :  { %2014 = vmatprep.subr.bf16.mxu0 %v2013_v33 }
 0x91b   :  { %2016 = vmatpush3.bf16.msra.mxu0 %v2013_v33 }
 0x91e   :  { %1937 = vmatmul.mubr.msk.f32.vlgmr.msra.gmra.mrb[20].mxu0 %vm213_vm1, %v1718_v0 }
 0x91f   :  { %1939 = vmatprep.mubr.msk.f32.mxu0 %vm213_vm1, %v1719_v34 }
 0x922   :  { %1940 = vmatmul.mubr.msk.f32.gmra.mrb[22].mxu0 %vm213_vm1, %v1720_v8 }
 0x9f1   :  { %v1938_v37 = vpop.f32.mrb[20].mxu0 }
 0x9f2   :  { %v1460_v38 = vadd.f32 %v1938_v37, %v1364_v36  ;;  %v1454_v39 = vpop.f32.mrb[21].mxu0 }
 0x9f3   :  { %v1455_v40 = vadd.f32 %v1454_v39, %v2477_v13  ;;  %v985_v13 = vrot.slane %v980_v57, %v2481_v25 }
 0x9f4   :  { %2045 = vtanh.f32 %v1460_v38 }
 0x9f5   :  { %2047 = vtanh.f32 %v1455_v40  ;;  %v1941_v41 = vpop.f32.mrb[22].mxu0  ;;  %v986_v2 = vadd.f32 %v985_v13, %v2486_v42  ;;  %v1731_v42 = vld [vmem:[%s2600_s7 + $0x28] sm:$0xff] }
 0x9f6   :  { %v1464_v43 = vpop.f32.mrb[23].mxu0  ;;  %v1470_v63 = vadd.f32 %v1941_v41, %v1374_v53 }
 0x9f7   :  { %v1465_v7 = vadd.f32 %v1464_v43, %v2479_v23 }
 0x9fe   :  { %v2046_v44 = vpop.eup %2045 }
 0x9ff   :  { %v2048_v45 = vpop.eup %2047  ;;  %v1476_v1 = vmul.f32 2.0, %v2046_v44 }
 0xa00   :  { %v1475_v5 = vmul.f32 2.0, %v2048_v45 }
 0xa01   :  { %v1479_v46 = vmul.f32 1.442695, %v1476_v1 }
 0xa02   :  { %v1477_v48 = vmul.f32 1.442695, %v1475_v5  ;;  %v1485_v51 = vadd.f32 %v1476_v1, %v1475_v5 }
 0xa03   :  { %2049 = vpow2.f32 %v1479_v46 }
 0xa04   :  { %2051 = vpow2.f32 %v1477_v48  ;;  %v1486_v52 = vrot.slane %v1485_v51, 4 }
 0xa06   :  { %v1487_v54 = vadd.f32 %v1486_v52, %v1485_v51 }
 0xa08   :  { %v1488_v55 = vrot.slane %v1487_v54, 2 }
 0xa0a   :  { %v1489_v56 = vadd.f32 %v1488_v55, %v1487_v54 }
 0xa0c   :  { %v1490_v58 = vrot.slane %v1489_v56, 1 }
 0xa0d   :  { %v2050_v61 = vpop.eup %2049 }
 0xa0e   :  { %v2052_v62 = vpop.eup %2051  ;;  %v1482_v3 = vmul.f32 %v2050_v61, %v2496_v47  ;;  %v1491_v4 = vadd.f32 %v1490_v58, %v1489_v56 }
 0xa0f   :  { %v1481_v9 = vmul.f32 %v2052_v62, %v2499_v49 }
 0xa10   :  { %v1484_v11 = vadd.f32 %v1482_v3, %v1470_v63  ;;  %v1492_v12 = vadd.f32 %v1491_v4, %v986_v2 }
 0xa11   :  { %v1483_v14 = vadd.f32 %v1481_v9, %v1465_v7 }
 0xa12   :  { %v1504_v59 = vadd.f32 %v1503_v10, %v1492_v12 }
 0xa13   :  { %v2017_v15 = vpack.c.bf16 %v1484_v11, %v1483_v14 }
 0xa14   :  { %1604 = vst [vmem:[#allocation6] sm:$0x1] %v1504_v59 }
 0xa15   :  { %2018 = vmatprep.subr.bf16.mxu1 %v2017_v15 }
 0xa16   :  { %2020 = vmatpush3.bf16.msra.mxu1 %v2017_v15 }
 0xa19   :  { %1947 = vmatmul.mubr.msk.f32.vlgmr.msra.gmra.mrb[16].mxu1 %vm83_vm0, %v1731_v42 }
 0xa1a   :  { %2086 = shalt.err (!%p2083_p12)
}
 0xa1b   :  { %s2087_s23 = scalar_lea.hbm %s2604_s11, 16 }
 0xa1c   :  { %p2088_p13 = scmp.ne.s32.totalorder %s2604_s11, %s2087_s23  ;;  %p2091_p0 = scmp.lt.u32.totalorder %s2087_s23, %s2604_s11 }
 0xa1e   :  { %p2093_p1 = pnand %p2091_p0, %p2088_p13 }
 0xa20   :  { %2096 = shalt.err (!%p2093_p1)
}
 0xa21   :  { %1626 = dma.vmem_to_hbm [thread:$0]  %s1624_s2, 16, %s2604_s11, [#allocation7]   ;;  %v1519_v23 = vpop.permute.xlu0 %1518  ;;  %v1514_v47 = vpop.permute.xlu1 %1513 }
 0xa22   :  { %s2130_s29 = smov [#allocation5]  }
 0xa23   :  { %s1610_s30 = sshll.u32 %s2130_s29, 4  ;;  %s1611_s30 = int_to_ptr.vmem [resolvable:$true] %s1610_s30 }
 0xa24   :  { %s2097_s12 = scalar_lea.vmem %s1611_s30, 256  ;;  %p2102_p3 = scmp.lt.s32.totalorder %s1611_s30, %s1611_s30 }
 0xa25   :  { %p2098_p2 = scmp.ne.s32.totalorder %s1611_s30, %s2097_s12  ;;  %p2103_p4 = scmp.lt.s32.totalorder %s2097_s12, %s2097_s12 }
 0xa27   :  { %p2104_p5 = por %p2103_p4, %p2102_p3 }
 0xa29   :  { %p2105_p6 = pnand %p2104_p5, %p2098_p2 }
 0xaec   :  { %v1948_v25 = vpop.f32.mrb[16].mxu1 }
 0xaed   :  { %v1599_v49 = vadd.f32 %v1948_v25, %v1519_v23  ;;  %v1593_v60 = vpop.f32.mrb[17].mxu1 }
 0xaee   :  { %v1594_v16 = vadd.f32 %v1593_v60, %v1514_v47 }
 0xaef   :  { %1603 = vst [vmem:[#allocation5 + $0x8] sm:$0xff] %v1599_v49 }
 0xaf0   :  { %1602 = vst [vmem:[#allocation5] sm:$0xff] %v1594_v16 }
 0xaf1   :  { %2108 = shalt.err (!%p2105_p6)
}
 0xaf2   :  { %s2109_s3 = scalar_lea.hbm %s2603_s10, 256 }
 0xaf3   :  { %p2110_p7 = scmp.ne.s32.totalorder %s2603_s10, %s2109_s3  ;;  %p2113_p8 = scmp.lt.u32.totalorder %s2109_s3, %s2603_s10 }
 0xaf5   :  { %p2115_p9 = pnand %p2113_p8, %p2110_p7 }
 0xaf7   :  { %2118 = shalt.err (!%p2115_p9)
}
 0xaf8   :  { %1616 = dma.vmem_to_hbm [thread:$0]  %s1611_s30, 256, %s2603_s10, [#allocation4], %s2126_s27, %s2126_s27, %s2127_s28  }
 0xaf9   :  { %2121 = dma.done.wait [#allocation4], 256  }
 0xafa   :  { %2122 = vsyncadd [#allocation4], 4294967040 }
 0xafb   :  { %2123 = dma.done.wait [#allocation7], 16  }
 0xafc   :  { %2124 = vsyncadd [#allocation7], 4294967280 }
 0xafd   :  { %1633 = vsyncpa [#allocation3], 1 }
 0xafe   :  { %1634 = vsyncpa [#allocation4], 1 }
 0xaff   :  { %1635 = vsyncpa [#allocation7], 1 }

</bundles_post_ra>
